<compile_context>
chip_gen: v7x
topology: tpu7x:2x2x1
jax: 0.10.0
libtpu: 0.0.40
codegen_flags: <defaults>
</compile_context>

<pallas_src>
import math

import jax
import jax.numpy as jnp
from jax.experimental import pallas as pl
from jax.experimental.pallas import tpu as pltpu


# ----------------------------------------------------------------------------
# Tiling helpers
# ----------------------------------------------------------------------------
def _largest_divisor_leq(n: int, cap: int) -> int:
    cap = max(1, min(n, cap))
    for d in range(cap, 0, -1):
        if n % d == 0:
            return d
    return 1


def _pick_q_tile(Tq: int, Tk: int, Dv: int, itemsize: int, budget_bytes: int) -> int:
    """Largest q-tile (multiple of 8 dividing Tq, or Tq itself) whose
    double-buffered value block (Tk, tq, Dv) stays under `budget_bytes`."""
    per_row = 2 * Tk * Dv * itemsize           # 2 pipeline buffers of the value stream
    max_tq = max(1, budget_bytes // max(per_row, 1))
    if Tq <= max_tq:
        return Tq
    best = 0
    for t in range(8, Tq, 8):
        if Tq % t == 0 and t <= max_tq:
            best = t
    if best:
        return best
    # TODO(synk): stream Tk with an online-softmax accumulator (flash-style) when
    # even a single q-row of the value block does not fit the VMEM budget.
    return Tq


def _pick_k_chunk(Tk: int, tq: int, Dv: int) -> int:
    """k-chunk so the per-chunk (ck, tq, Dv) f32 product stays ~<=1 MiB and the
    unrolled chunk loop stays short (<= ~32 chunks)."""
    cap = max(1, (1 << 20) // max(1, tq * Dv * 4))
    cap = max(cap, -(-Tk // 32))
    ck = _largest_divisor_leq(Tk, cap)
    if Tk // ck > 32:
        ck = Tk
    return ck


# ----------------------------------------------------------------------------
# Kernel
# ----------------------------------------------------------------------------
def _make_kernel(ck: int):
    def kernel(qs_ref, ks_ref, v_ref, o_ref):
        # qs_ref, ks_ref: (1, tq, Tk) f32  -- sum_d(query), sum_d(key) (already i/j swapped)
        # v_ref:          (1, Tk, tq, Dv)  -- value in its NATIVE layout (no wrapper transpose)
        # o_ref:          (1, tq, Dv)
        tq = qs_ref.shape[1]
        tk = qs_ref.shape[2]
        dv = v_ref.shape[3]

        # torch: matmul((...,D,1),(...,1,D)).sum((4,5)) / sqrt(1)  ==  sum_d(q)*sum_d(k)
        # (scale = sqrt(query.shape[-1]) was evaluated AFTER query re-indexing == 1.0;
        #  torch quirk preserved on purpose.)
        score = qs_ref[0] * ks_ref[0]                             # (tq, Tk) f32

        # softmax over Tk (lane axis); denominator reciprocal goes to the EUP slot.
        m = jnp.max(score, axis=-1, keepdims=True)
        e = jnp.exp(score - m)
        p = e * pl.reciprocal(jnp.sum(e, axis=-1, keepdims=True), approx=True)

        # i/j swap of the probability matrix on-chip (2-D transpose -> XLU, ~free).
        pt = p.T                                                  # (Tk, tq)

        # out[q, :] = sum_k p[q, k] * v[k, q, :]
        # Per-query value slab => no plain matmul; accumulate in f32 over k-chunks
        # to avoid a full (tq, Tk, Dv) f32 temporary.
        acc = jnp.zeros((tq, dv), jnp.float32)
        for c in range(tk // ck):
            lo = c * ck
            pc = pt[lo:lo + ck, :]                                # (ck, tq)
            vc = v_ref[0, lo:lo + ck, :, :].astype(jnp.float32)   # (ck, tq, Dv)
            acc = acc + jnp.sum(pc[:, :, None] * vc, axis=0)
        o_ref[0] = acc.astype(o_ref.dtype)

    return kernel


# ----------------------------------------------------------------------------
# Wrapper
# ----------------------------------------------------------------------------
def dot_attention_v3(query, key, value, *, value_vmem_budget_bytes=8 << 20):
    """Pallas implementation of DotAttentionV3.forward.

    query: (B, 1, Tq, Tk, D), key: (B, 1, Tk, Tq, D), value: (B, 1, Tk, Tq, Dv)
    returns: (B, Tq, Dv)
    """
    B, _, Tq, Tk, D = query.shape
    Dv = value.shape[-1]
    out_dtype = query.dtype

    # Hoist the D-reductions (kernel only needs sum_d q / sum_d k); f32 accumulation
    # even for bf16 inputs.  Only the tiny summed-key matrix is transposed.
    qs = jnp.sum(query[:, 0].astype(jnp.float32), axis=-1)                      # (B, Tq, Tk)
    ks = jnp.swapaxes(jnp.sum(key[:, 0].astype(jnp.float32), axis=-1), 1, 2)    # (B, Tq, Tk)
    # Value stays in native layout: no full-tensor HBM transpose round-trip.
    v = value[:, 0]                                                             # (B, Tk, Tq, Dv)

    itemsize = jnp.dtype(value.dtype).itemsize
    tq = _pick_q_tile(Tq, Tk, Dv, itemsize, value_vmem_budget_bytes)
    ck = _pick_k_chunk(Tk, tq, Dv)
    grid = (B, Tq // tq)

    cost = pl.CostEstimate(
        flops=2 * B * Tq * Tk * Dv + 6 * B * Tq * Tk,
        transcendentals=B * Tq * Tk,
        bytes_accessed=(2 * 4 * B * Tq * Tk
                        + itemsize * B * Tk * Tq * Dv
                        + jnp.dtype(out_dtype).itemsize * B * Tq * Dv),
    )

    out = pl.pallas_call(
        _make_kernel(ck),
        out_shape=jax.ShapeDtypeStruct((B, Tq, Dv), out_dtype),
        grid_spec=pltpu.PrefetchScalarGridSpec(
            num_scalar_prefetch=0,
            grid=grid,
            in_specs=[
                pl.BlockSpec((1, tq, Tk), lambda b, qi: (b, qi, 0)),
                pl.BlockSpec((1, tq, Tk), lambda b, qi: (b, qi, 0)),
                pl.BlockSpec((1, Tk, tq, Dv), lambda b, qi: (b, 0, qi, 0)),
            ],
            out_specs=pl.BlockSpec((1, tq, Dv), lambda b, qi: (b, qi, 0)),
        ),
        compiler_params=pltpu.CompilerParams(
            dimension_semantics=("parallel", "parallel"),
            vmem_limit_bytes=32 * 1024 * 1024,
        ),
        cost_estimate=cost,
    )(qs, ks, v)
    return out


# ----------------------------------------------------------------------------
# Pure-JAX transcription of the PyTorch forward (verification only)
# ----------------------------------------------------------------------------
def _torch_semantics_reference(query, key, value):
    transb = jnp.transpose(key, (0, 1, 3, 2, 4))[:, :, :, :, None, :]
    q = query[:, :, :, :, :, None]
    scale = math.sqrt(q.shape[-1])            # == 1.0 (query already re-indexed)
    score = jnp.sum(jnp.matmul(q, transb) / scale, axis=(4, 5))
    score = jnp.squeeze(score)
    if score.ndim == 2:
        score = score[None, :, :]
    sm = jax.nn.softmax(score, axis=-1)[:, :, None, :]
    val = jnp.transpose(jnp.squeeze(value, axis=1), (0, 2, 1, 3))
    return jnp.squeeze(jnp.matmul(sm, val), axis=-2)


if __name__ == "__main__":
    B, Tq, Tk, D, Dv = 2, 8, 8, 16, 16

    root = jax.random.PRNGKey(0)
    kq, kk, kv = jax.random.split(root, 3)
    query = jax.random.normal(kq, (B, 1, Tq, Tk, D), dtype=jnp.float32)
    keyt = jax.random.normal(kk, (B, 1, Tk, Tq, D), dtype=jnp.float32)
    value = jax.random.normal(kv, (B, 1, Tk, Tq, Dv), dtype=jnp.float32)

    out = jax.block_until_ready(dot_attention_v3(query, keyt, value))

    ref = _torch_semantics_reference(query, keyt, value)
    assert out.shape == (B, Tq, Dv), out.shape
    # approx reciprocal in the softmax normalization -> slightly relaxed tolerance
    assert jnp.allclose(out, ref, atol=2e-3, rtol=2e-3), float(jnp.max(jnp.abs(out - ref)))

    print("KERNEL_OK")
</pallas_src>

<mosaic_0001>
module attributes {stable_mosaic.version = 11 : i64} {
  func.func @kernel(%arg0: i32, %arg1: i32, %arg2: memref<1x8x8xf32, #tpu.memory_space<vmem>>, %arg3: memref<1x8x8xf32, #tpu.memory_space<vmem>>, %arg4: memref<1x8x8x16xf32, #tpu.memory_space<vmem>>, %arg5: memref<1x8x16xf32, #tpu.memory_space<vmem>>) attributes {dimension_semantics = [#tpu.dimension_semantics<parallel>, #tpu.dimension_semantics<parallel>], iteration_bounds = array<i64: 2, 1>, scalar_prefetch = 0 : i64, scratch_operands = 0 : i64, tpu.core_type = #tpu.core_type<tc>, window_params = [{transform_indices = @transform_0, window_bounds = array<i64: 1, 8, 8>}, {transform_indices = @transform_1, window_bounds = array<i64: 1, 8, 8>}, {transform_indices = @transform_2, window_bounds = array<i64: 1, 8, 8, 16>}, {transform_indices = @transform_3, window_bounds = array<i64: 1, 8, 16>}]} {
    %c0 = arith.constant 0 : index
    %c0_0 = arith.constant 0 : index
    %c0_1 = arith.constant 0 : index
    %0 = vector.load %arg2[%c0, %c0_0, %c0_1] : memref<1x8x8xf32, #tpu.memory_space<vmem>>, vector<1x8x8xf32>
    %1 = vector.shape_cast %0 : vector<1x8x8xf32> to vector<8x8xf32>
    %c0_2 = arith.constant 0 : index
    %c0_3 = arith.constant 0 : index
    %c0_4 = arith.constant 0 : index
    %2 = vector.load %arg3[%c0_2, %c0_3, %c0_4] : memref<1x8x8xf32, #tpu.memory_space<vmem>>, vector<1x8x8xf32>
    %3 = vector.shape_cast %2 : vector<1x8x8xf32> to vector<8x8xf32>
    %4 = arith.mulf %1, %3 : vector<8x8xf32>
    %cst = arith.constant dense<0xFF800000> : vector<8xf32>
    %5 = vector.multi_reduction <maximumf>, %4, %cst [1] : vector<8x8xf32> to vector<8xf32>
    %6 = vector.shape_cast %5 : vector<8xf32> to vector<8x1xf32>
    %7 = vector.broadcast %6 : vector<8x1xf32> to vector<8x8xf32>
    %8 = arith.subf %4, %7 : vector<8x8xf32>
    %9 = math.exp %8 : vector<8x8xf32>
    %cst_5 = arith.constant dense<0.000000e+00> : vector<8xf32>
    %10 = vector.multi_reduction <add>, %9, %cst_5 [1] : vector<8x8xf32> to vector<8xf32>
    %11 = vector.shape_cast %10 : vector<8xf32> to vector<8x1xf32>
    %12 = tpu.reciprocal %11 {approx = true} : vector<8x1xf32> -> vector<8x1xf32>
    %13 = vector.broadcast %12 : vector<8x1xf32> to vector<8x8xf32>
    %14 = arith.mulf %9, %13 : vector<8x8xf32>
    %15 = tpu.transpose %14, [1, 0] : vector<8x8xf32> -> vector<8x8xf32>
    %cst_6 = arith.constant 0.000000e+00 : f32
    %16 = vector.broadcast %cst_6 : f32 to vector<8x16xf32>
    %c0_7 = arith.constant 0 : index
    %c0_8 = arith.constant 0 : index
    %c0_9 = arith.constant 0 : index
    %c0_10 = arith.constant 0 : index
    %17 = vector.load %arg4[%c0_7, %c0_8, %c0_9, %c0_10] : memref<1x8x8x16xf32, #tpu.memory_space<vmem>>, vector<1x8x8x16xf32>
    %18 = vector.shape_cast %17 : vector<1x8x8x16xf32> to vector<8x8x16xf32>
    %19 = vector.shape_cast %15 : vector<8x8xf32> to vector<8x8x1xf32>
    %20 = vector.broadcast %19 : vector<8x8x1xf32> to vector<8x8x16xf32>
    %21 = arith.mulf %20, %18 : vector<8x8x16xf32>
    %cst_11 = arith.constant dense<0.000000e+00> : vector<8x16xf32>
    %22 = vector.multi_reduction <add>, %21, %cst_11 [0] : vector<8x8x16xf32> to vector<8x16xf32>
    %23 = arith.addf %16, %22 : vector<8x16xf32>
    %c0_12 = arith.constant 0 : index
    %c0_13 = arith.constant 0 : index
    %c0_14 = arith.constant 0 : index
    %24 = vector.load %arg5[%c0_12, %c0_13, %c0_14] : memref<1x8x16xf32, #tpu.memory_space<vmem>>, vector<1x8x16xf32>
    %25 = vector.shape_cast %24 : vector<1x8x16xf32> to vector<8x16xf32>
    %26 = vector.shape_cast %23 : vector<8x16xf32> to vector<1x8x16xf32>
    tpu.vector_store %arg5[%c0_12, %c0_13, %c0_14], %26 {strides = array<i32>} : memref<1x8x16xf32, #tpu.memory_space<vmem>>, vector<1x8x16xf32>,
    return
  }
  func.func @transform_0(%arg0: i32, %arg1: i32) -> (i32, i32, i32) {
    %c0_i32 = arith.constant 0 : i32
    %c0_i32_0 = arith.constant 0 : i32
    return %arg0, %arg1, %c0_i32 : i32, i32, i32
  }
  func.func @transform_1(%arg0: i32, %arg1: i32) -> (i32, i32, i32) {
    %c0_i32 = arith.constant 0 : i32
    %c0_i32_0 = arith.constant 0 : i32
    return %arg0, %arg1, %c0_i32 : i32, i32, i32
  }
  func.func @transform_2(%arg0: i32, %arg1: i32) -> (i32, i32, i32, i32) {
    %c0_i32 = arith.constant 0 : i32
    %c0_i32_0 = arith.constant 0 : i32
    %c0_i32_1 = arith.constant 0 : i32
    return %arg0, %c0_i32, %arg1, %c0_i32_0 : i32, i32, i32, i32
  }
  func.func @transform_3(%arg0: i32, %arg1: i32) -> (i32, i32, i32) {
    %c0_i32 = arith.constant 0 : i32
    %c0_i32_0 = arith.constant 0 : i32
    return %arg0, %arg1, %c0_i32 : i32, i32, i32
  }
}

</mosaic_0001>

<bundles_post_ra>
// kernel: tpu_custom_call.1
= control target key start
LH: loop header
LB: loop body
LE: loop exit
PB: predicated region body
PF: predicated region fallthrough
CT: control target
= control target key end

     0   :  { %s1152_s0 = inlined_call_operand.hbm [shape: f32[2,8,8], index: 0, kind: input, shape index: {}]   ;;  %s1153_s1 = inlined_call_operand.hbm [shape: f32[2,8,8], index: 1, kind: input, shape index: {}]   ;;  %s1154_s2 = inlined_call_operand.hbm [shape: f32[2,8,8,16], index: 2, kind: input, shape index: {}]   ;;  %s1155_s3 = inlined_call_operand.hbm [shape: f32[2,8,16], index: 3, kind: output, shape index: {}]  }
   0x1   :  { %1161 = sst [smem:[#allocation15_spill]] %s1153_s1 }
   0x2   :  { %8 = vsyncpa [#allocation3], 0 }
   0x3   :  { %10 = vsyncpa [#allocation3 + $0x1], 0 }
   0x4   :  { %11 = vsyncpa [#allocation6], 0 }
   0x5   :  { %13 = vsyncpa [#allocation6 + $0x1], 0 }
   0x6   :  { %14 = vsyncpa [#allocation4], 0 }
   0x7   :  { %16 = vsyncpa [#allocation4 + $0x1], 0  ;;  %s865_s12 = smov 0   ;;  %s867_s13 = smov 0  }
   0x8   :  { %s869_s14 = smov 0   ;;  %s871_s15 = smov 0  }
   0x9   :  { %s873_s16 = smov 0   ;;  %s875_s17 = smov 0  }
   0xa LB: > { %1162 = sst [smem:[#allocation12_spill]] %s825_s14  ;;  %s896_s18 = sadd.s32 4294967295, %s837_s17   ;;  %s837_s17 = sphi %s875_s17, %s22_s17   ;;  %s833_s16 = sphi %s873_s16, %s1185_s16   ;;  %s829_s15 = sphi %s871_s15, %s1184_s15   ;;  %s825_s14 = sphi %s869_s14, %s1180_s14   ;;  %s821_s13 = sphi %s867_s13, %s1183_s13   ;;  %s817_s12 = sphi %s865_s12, %s1182_s12  }
   0xb   : > { %s562_s19 = sadd.s32 4294967294, %s837_s17   ;;  %s34_s20 = sadd.s32 1, %s833_s16 }
   0xc   : > { %s43_s21 = sadd.s32 1, %s825_s14  ;;  %p36_p0 = scmp.ge.s32.totalorder %s34_s20, 2 }
   0xd   : > { %p50_p1 = scmp.ne.s32.totalorder %s825_s14, %s821_s13  ;;  %p51_p2 = scmp.eq.s32.totalorder %s837_s17, 0 }
   0xe   : > { %p56_p3 = scmp.ne.s32.totalorder %s821_s13, %s817_s12  ;;  %s1187_s20 = smov (%p36_p0, %s34_s20), 0 }
   0xf   : > { %1163 = sst [smem:[#allocation13_spill]] %s1187_s20  ;;  %p908_p4 = por %p51_p2, %p50_p1 }
  0x10   : > { %p57_p5 = scmp.eq.s32.totalorder %s896_s18, 0  ;;  %s38_s23 = ssub.s32 %s833_s16, %s1187_s20 }
  0x11   : > { %p138_p6 = scmp.eq.s32.totalorder %s896_s18, 1  ;;  %p41_p7 = scmp.eq.s32.totalorder %s38_s23, 0 }
  0x12   : > { %p916_p8 = por %p57_p5, %p56_p3  ;;  %p144_p10 = scmp.eq.s32.totalorder %s562_s19, 1 }
  0x13   : > { %p920_p9 = por %p138_p6, %p50_p1  ;;  %p604_p13 = scmp.lt.s32.totalorder %s837_s17, 2 }
  0x14   : > { %s1165_s24 = scalar_select %p916_p8, 1, 0 }
  0x15   : > { %s1166_s25 = scalar_select %p920_p9, 1, 0 }
  0x16   : > { %s925_s26 = scalar_select %p41_p7, %s825_s14, %s43_s21  }
  0x17   : > { %p927_p11 = por %p144_p10, %p56_p3  ;;  %s934_s28 = sand.u32 1, %s825_s14  }
  0x18   : > { %1167 = sst [smem:[#allocation14_spill]] %s925_s26  ;;  %s1156_s29 = sshll.u32 %s934_s28, 3 }
  0x19   : > { %s1168_s27 = scalar_select %p927_p11, 1, 0 }
  0x1a   : > { %s566_s30 = sshll.u32 %s833_s16, 7  ;;  %p940_p0 = pnand %p604_p13, %p908_p4 }
  0x1b   : > { %s183_s5 = sand.u32 1, %s837_s17   ;;  %s1170_s1 = sld [smem:[#allocation15_spill]] }
  0x1c   : > { %s187_s9 = scalar_lea.vmem [#allocation5], %s1156_s29  ;;  %s569_s11 = sshll.u32 %s934_s28, 6 }
  0x1d   : > { %s195_s10 = sshll.u32 %s187_s9, 4  ;;  %s957_s19 = scalar_lea.sflag [#allocation6], %s183_s5  ;;  %s955_s10 = int_to_ptr.vmem [resolvable:$true] %s195_s10 }
  0x1e   : > { %p963_p2 = pneg %p940_p0 }
  0x21   : > { %s950_s8 = scalar_lea.hbm %s1170_s1, %s566_s30  ;;  %s666_s7 = scalar_lea.hbm %s1170_s1, 256 }
  0x22   : > { %s661_s21 = scalar_lea.hbm %s950_s8, 128  ;;  %p667_p5 = scmp.lt.u32.totalorder %s950_s8, %s1170_s1 }
  0x23   : > { %p662_p1 = scmp.ne.s32.totalorder %s950_s8, %s661_s21  ;;  %p668_p6 = scmp.lt.u32.totalorder %s666_s7, %s661_s21 }
  0x24   : > { %p670_p10 = scmp.lt.u32.totalorder %s661_s21, %s950_s8 }
  0x25   : > { %p664_p3 = pnand %p963_p2, %p662_p1  ;;  %p669_p7 = por %p668_p6, %p667_p5 }
  0x27   : > { %p665_p4 = pneg %p664_p3  ;;  %p671_p13 = por %p670_p10, %p669_p7 }
  0x29   : > { %p672_p12 = pnand %p671_p13, %p665_p4 }
  0x2b   : > { %675 = shalt.err (!%p672_p12)
}
  0x2c   : > { %s676_s5 = scalar_lea.vmem %s955_s10, 128  ;;  %s839_s23 = smov [#allocation5]  }
  0x2d   : > { %p677_p1 = scmp.ne.s32.totalorder %s955_s10, %s676_s5  ;;  %s681_s6 = sshll.u32 %s839_s23, 4  ;;  %s682_s6 = int_to_ptr.vmem [resolvable:$false] %s681_s6 }
  0x2e   : > { %s683_s29 = scalar_lea.vmem %s682_s6, 256  ;;  %p684_p9 = scmp.lt.s32.totalorder %s955_s10, %s682_s6 }
  0x2f   : > { %p679_p3 = pnand %p677_p1, %p963_p2  ;;  %p685_p8 = scmp.lt.s32.totalorder %s683_s29, %s676_s5 }
  0x31   : > { %p680_p11 = pneg %p679_p3  ;;  %p686_p5 = por %p685_p8, %p684_p9 }
  0x33   : > { %p687_p6 = pnand %p686_p5, %p680_p11 }
  0x35   : > { %690 = shalt.err (!%p687_p6)
}
  0x36   : > { %596 = dma.hbm_to_vmem [thread:$0]  (!%p940_p0), %s950_s8, 128, %s955_s10, %s957_s19  }
  0x37   : > { %s206_s21 = scalar_lea.vmem [#allocation7], %s569_s11  ;;  %p572_p8 = scmp.ge.s32.totalorder %s837_s17, 1 }
  0x38   : > { %s214_s7 = sshll.u32 %s206_s21, 4  ;;  %p222_p9 = scmp.lt.s32.totalorder %s837_s17, 3  ;;  %s990_s7 = int_to_ptr.vmem [resolvable:$true] %s214_s7 }
  0x39   : > { %s1002_s6 = scalar_lea.hbm %s1152_s0, %s566_s30  ;;  %s1173_s29 = sshll.u32 %s934_s28, 3 }
  0x3a   : > { %p993_p11 = pnand %p572_p8, %p222_p9  ;;  %s168_s8 = scalar_lea.vmem [#allocation2], %s1173_s29 }
  0x3b   : > { %s176_s10 = sshll.u32 %s168_s8, 4  ;;  %s581_s11 = sshll.u32 %s833_s16, 10  ;;  %s1007_s10 = int_to_ptr.vmem [resolvable:$true] %s176_s10 }
  0x3c   : > { %s1172_s9 = scalar_select %p993_p11, 1, 0 }
  0x3d   : > { %s1012_s20 = scalar_lea.hbm %s1154_s2, %s581_s11  ;;  %s165_s26 = scalar_lea.sflag [#allocation3], %s934_s28 }
  0x3e   : > { %s691_s14 = scalar_lea.hbm %s1002_s6, 128  ;;  %s696_s23 = scalar_lea.hbm %s1152_s0, 256 }
  0x3f   : > { %p692_p12 = scmp.ne.s32.totalorder %s1002_s6, %s691_s14  ;;  %p697_p10 = scmp.lt.u32.totalorder %s1002_s6, %s1152_s0 }
  0x40   : > { %p698_p13 = scmp.lt.u32.totalorder %s696_s23, %s691_s14  ;;  %p700_p3 = scmp.lt.u32.totalorder %s691_s14, %s1002_s6 }
  0x41   : > { %p694_p4 = pnand %p692_p12, %p963_p2 }
  0x42   : > { %p699_p1 = por %p698_p13, %p697_p10 }
  0x43   : > { %p695_p7 = pneg %p694_p4 }
  0x44   : > { %p701_p5 = por %p700_p3, %p699_p1 }
  0x46   : > { %p702_p6 = pnand %p701_p5, %p695_p7 }
  0x48   : > { %705 = shalt.err (!%p702_p6)
}
  0x49   : > { %s706_s1 = scalar_lea.vmem %s1007_s10, 128  ;;  %s840_s28 = smov [#allocation2]  }
  0x4a   : > { %p707_p8 = scmp.ne.s32.totalorder %s1007_s10, %s706_s1  ;;  %s711_s11 = sshll.u32 %s840_s28, 4  ;;  %s712_s11 = int_to_ptr.vmem [resolvable:$false] %s711_s11 }
  0x4b   : > { %s713_s21 = scalar_lea.vmem %s712_s11, 256  ;;  %p714_p4 = scmp.lt.s32.totalorder %s1007_s10, %s712_s11 }
  0x4c   : > { %p709_p9 = pnand %p707_p8, %p963_p2  ;;  %p715_p11 = scmp.lt.s32.totalorder %s713_s21, %s706_s1 }
  0x4e   : > { %p710_p12 = pneg %p709_p9  ;;  %p716_p10 = por %p715_p11, %p714_p4 }
  0x50   : > { %p717_p13 = pnand %p716_p10, %p710_p12 }
  0x52   : > { %720 = shalt.err (!%p717_p13)
}
  0x53   : > { %593 = dma.hbm_to_vmem [thread:$0]  (!%p940_p0), %s1002_s6, 128, %s1007_s10, %s165_s26  }
  0x54   : > { %s721_s14 = scalar_lea.hbm %s1012_s20, 1024  ;;  %s726_s23 = scalar_lea.hbm %s1154_s2, 2048 }
  0x55   : > { %p722_p7 = scmp.ne.s32.totalorder %s1012_s20, %s721_s14  ;;  %p727_p11 = scmp.lt.u32.totalorder %s1012_s20, %s1154_s2 }
  0x56   : > { %p728_p5 = scmp.lt.u32.totalorder %s726_s23, %s721_s14  ;;  %p730_p8 = scmp.lt.u32.totalorder %s721_s14, %s1012_s20 }
  0x57   : > { %p724_p1 = pnand %p722_p7, %p963_p2 }
  0x58   : > { %p729_p6 = por %p728_p5, %p727_p11 }
  0x59   : > { %p725_p3 = pneg %p724_p1 }
  0x5a   : > { %p731_p9 = por %p730_p8, %p729_p6 }
  0x5c   : > { %p732_p12 = pnand %p731_p9, %p725_p3 }
  0x5e   : > { %735 = shalt.err (!%p732_p12)
}
  0x5f   : > { %s736_s26 = scalar_lea.vmem %s990_s7, 1024  ;;  %s841_s6 = smov [#allocation7]  }
  0x60   : > { %p737_p4 = scmp.ne.s32.totalorder %s990_s7, %s736_s26  ;;  %s741_s10 = sshll.u32 %s841_s6, 4  ;;  %s742_s10 = int_to_ptr.vmem [resolvable:$false] %s741_s10 }
  0x61   : > { %s743_s1 = scalar_lea.vmem %s742_s10, 2048  ;;  %p744_p7 = scmp.lt.s32.totalorder %s990_s7, %s742_s10 }
  0x62   : > { %p739_p10 = pnand %p737_p4, %p963_p2  ;;  %p745_p1 = scmp.lt.s32.totalorder %s743_s1, %s736_s26 }
  0x64   : > { %p740_p13 = pneg %p739_p10  ;;  %p746_p11 = por %p745_p1, %p744_p7 }
  0x66   : > { %p747_p5 = pnand %p746_p11, %p740_p13 }
  0x68   : > { %750 = shalt.err (!%p747_p5)
}
  0x69   : > { %s842_s28 = smov 128   ;;  %s843_s11 = smov 8  }
  0x6a   : > { %599 = dma.hbm_to_vmem [thread:$0]  (!%p940_p0), %s1012_s20, 1024, %s990_s7, %s957_s19, %s842_s28, %s842_s28, %s843_s11  }
  0x6b   : > { %p1174_p2 = scmp.ne.s32.totalorder %s1172_s9, 0 }
  0x6c   : > { %s1061_s22 = sand.u32 (!%p1174_p2), 1, %s821_s13   ;;  %p1175_p3 = scmp.ne.s32.totalorder (!%p1174_p2), %s1165_s24, 0 }
  0x6d   : > { %226 = sbr.rel (%p1174_p2) target bundleno = 718 (0x2ce), region = 32  ;;  %s1064_s21 = sshll.u32 (!%p1174_p2), %s1061_s22, 3 }
  0x6e   : > { %s229_s14 = scalar_lea.sflag (!%p1174_p2), [#allocation3], %s1061_s22  ;;  %s232_s30 = scalar_lea.vmem (!%p1174_p2), [#allocation2], %s1064_s21 }
  0x74   : > { %804 = dma.done.wait (%p1175_p3), %s229_s14, 128  }
  0x75   : > { %806 = vsyncadd (%p1175_p3), %s229_s14, 4294967168  ;;  %s237_s20 = sand.u32 1, %s896_s18   ;;  %s241_s19 = scalar_lea.vmem [#allocation5], %s1064_s21 }
  0x76   : > { %s238_s4 = scalar_lea.sflag [#allocation6], %s237_s20 }
  0x77   : > { %808 = dma.done.wait (%p1175_p3), %s238_s4, 1152  }
  0x78   : > { %810 = vsyncadd (%p1175_p3), %s238_s4, 4294966144  ;;  %v283_v0 = vld [vmem:[%s232_s30] sm:$0xff]  ;;  %v284_v1 = vld [vmem:[%s241_s19] sm:$0xff]  ;;  %vm286_vm0 = vcmask 64512   ;;  %v338_v12 = vlaneseq  ;;  %s575_s18 = sshll.u32 %s1061_s22, 6  ;;  %vm402_vm1 = vcmask 130048  }
  0x79   : > { %v285_v2 = vmul.f32 %v284_v1, %v283_v0  ;;  %s1079_s24 = scalar_lea.vmem [#allocation7], %s575_s18  ;;  %s578_s7 = sshll.u32 %s829_s15, 7 }
  0x7a   : > { %v339_v13 = vshrl.u32 %v338_v12, 7  ;;  %v331_v31 = vld [vmem:[%s1079_s24 + $0x8] sm:$0xff]  ;;  %v330_v32 = vld [vmem:[%s1079_s24] sm:$0xff]  ;;  %v332_v37 = vld [vmem:[%s1079_s24 + $0x10] sm:$0xff]  ;;  %s282_s9 = scalar_lea.vmem [#allocation8], %s1064_s21  ;;  %s1102_s8 = scalar_lea.hbm %s1155_s3, %s578_s7 }
  0x7b   : > { %v287_v3 = vsel %vm286_vm0, %v285_v2, -inf  ;;  %v334_v43 = vld [vmem:[%s1079_s24 + $0x20] sm:$0xff]  ;;  %v333_v44 = vld [vmem:[%s1079_s24 + $0x18] sm:$0xff]  ;;  %v336_v51 = vld [vmem:[%s1079_s24 + $0x30] sm:$0xff]  ;;  %s435_s5 = sshll.u32 %s282_s9, 4  ;;  %s421_s26 = scalar_lea.sflag [#allocation4], %s1061_s22  ;;  %s1104_s5 = int_to_ptr.vmem [resolvable:$true] %s435_s5 }
  0x7c   : > { %288 = vmax.xlane.f32.xlu0 %v287_v3  ;;  %v347_v14 = vsub.s32 1, %v339_v13  ;;  %v340_v15 = vsub.s32 0, %v339_v13  ;;  %v354_v19 = vsub.s32 2, %v339_v13  ;;  %v368_v20 = vsub.s32 4, %v339_v13  ;;  %v335_v53 = vld [vmem:[%s1079_s24 + $0x28] sm:$0xff]  ;;  %v337_v61 = vld [vmem:[%s1079_s24 + $0x38] sm:$0xff] }
  0x7d   : > { %v361_v23 = vsub.s32 3, %v339_v13  ;;  %v382_v24 = vsub.s32 6, %v339_v13  ;;  %v375_v27 = vsub.s32 5, %v339_v13  ;;  %v389_v29 = vsub.s32 7, %v339_v13  ;;  %s751_s15 = scalar_lea.vmem %s1104_s5, 128  ;;  %p1176_p6 = scmp.ne.s32.totalorder %s1166_s25, 0 }
  0x7e   : > { %p752_p0 = scmp.ne.s32.totalorder %s1104_s5, %s751_s15  ;;  %s844_s6 = smov [#allocation8]  }
  0x7f   : > { %s755_s10 = sshll.u32 %s844_s6, 4  ;;  %s756_s10 = int_to_ptr.vmem [resolvable:$false] %s755_s10 }
  0x80   : > { %p753_p8 = pnand %p752_p0, %p1176_p6  ;;  %s757_s1 = scalar_lea.vmem %s756_s10, 256 }
  0x81   : > { %p758_p12 = scmp.lt.s32.totalorder %s1104_s5, %s756_s10  ;;  %p759_p4 = scmp.lt.s32.totalorder %s757_s1, %s751_s15 }
  0x82   : > { %p754_p9 = pneg %p753_p8 }
  0x83   : > { %p760_p10 = por %p759_p4, %p758_p12 }
  0x85   : > { %p761_p13 = pnand %p760_p10, %p754_p9 }
 0x109   : > { %v289_v4 = vpop.xlane.xlu0 %288 }
 0x10a   : > { %v290_v5 = vsub.f32 %v285_v2, %v289_v4 }
 0x10c   : > { %v291_v6 = vmul.f32 1.442695, %v290_v5 }
 0x10e   : > { %657 = vpow2.f32 %v291_v6 }
 0x118   : > { %v658_v7 = vpop.eup %657 }
 0x119   : > { %v293_v8 = vsel %vm286_vm0, %v658_v7, 0.0 }
 0x11a   : > { %294 = vadd.xlane.f32.xlu0 %v293_v8 }
 0x1a7   : > { %v295_v9 = vpop.xlane.xlu0 %294 }
 0x1a8   : > { %659 = vrcp.f32 %v295_v9 }
 0x1b2   : > { %v660_v10 = vpop.eup %659 }
 0x1b3   : > { %v297_v11 = vmul.f32 %v660_v10, %v658_v7 }
 0x1b5   : > { %298 = vxpose.xlu1.b32.start.end [1/1] (short) (narrow) %v297_v11, 8 }
 0x235   : > { %v314_v16 = vpop.trf.xlu1 }
 0x236   : > { %v348_v17 = vrot.slane %v314_v16, %v347_v14  ;;  %v341_v18 = vrot.slane %v314_v16, %v340_v15  ;;  %v355_v21 = vrot.slane %v314_v16, %v354_v19  ;;  %v369_v22 = vrot.slane %v314_v16, %v368_v20 }
 0x237   : > { %v362_v25 = vrot.slane %v314_v16, %v361_v23  ;;  %v383_v26 = vrot.slane %v314_v16, %v382_v24  ;;  %v376_v28 = vrot.slane %v314_v16, %v375_v27  ;;  %v390_v30 = vrot.slane %v314_v16, %v389_v29 }
 0x238   : > { %350 = vbcast.lane.b32.xlu0 %v348_v17, 256  ;;  %343 = vbcast.lane.b32.xlu1 %v341_v18, 256 }
 0x23c   : > { %357 = vbcast.lane.b32.xlu0 %v355_v21, 256  ;;  %371 = vbcast.lane.b32.xlu1 %v369_v22, 256 }
 0x240   : > { %364 = vbcast.lane.b32.xlu0 %v362_v25, 256  ;;  %385 = vbcast.lane.b32.xlu1 %v383_v26, 256 }
 0x244   : > { %378 = vbcast.lane.b32.xlu0 %v376_v28, 256 }
 0x248   : > { %392 = vbcast.lane.b32.xlu0 %v390_v30, 256 }
 0x2aa   : > { %v351_v33 = vpop.permute.xlu0 %350  ;;  %v344_v34 = vpop.permute.xlu1 %343 }
 0x2ab   : > { %v395_v35 = vmul.f32 %v351_v33, %v331_v31  ;;  %v394_v36 = vmul.f32 %v344_v34, %v330_v32 }
 0x2ad   : > { %v404_v40 = vsel %vm402_vm1, %v395_v35, 0.0  ;;  %v403_v41 = vsel %vm402_vm1, %v394_v36, 0.0 }
 0x2ae   : > { %v358_v38 = vpop.permute.xlu0 %357  ;;  %v372_v39 = vpop.permute.xlu1 %371  ;;  %v405_v46 = vadd.f32 %v404_v40, %v403_v41 }
 0x2af   : > { %v396_v42 = vmul.f32 %v358_v38, %v332_v37  ;;  %v398_v48 = vmul.f32 %v372_v39, %v334_v43 }
 0x2b1   : > { %v406_v45 = vsel %vm402_vm1, %v396_v42, 0.0  ;;  %v410_v57 = vsel %vm402_vm1, %v398_v48, 0.0 }
 0x2b2   : > { %v365_v47 = vpop.permute.xlu0 %364  ;;  %v407_v50 = vadd.f32 %v406_v45, %v405_v46  ;;  %v386_v52 = vpop.permute.xlu1 %385 }
 0x2b3   : > { %v397_v49 = vmul.f32 %v365_v47, %v333_v44  ;;  %v400_v58 = vmul.f32 %v386_v52, %v336_v51 }
 0x2b5   : > { %v408_v54 = vsel %vm402_vm1, %v397_v49, 0.0  ;;  %v414_v1 = vsel %vm402_vm1, %v400_v58, 0.0 }
 0x2b6   : > { %v409_v55 = vadd.f32 %v408_v54, %v407_v50  ;;  %v379_v56 = vpop.permute.xlu0 %378 }
 0x2b7   : > { %v399_v59 = vmul.f32 %v379_v56, %v335_v53 }
 0x2b8   : > { %v411_v60 = vadd.f32 %v410_v57, %v409_v55 }
 0x2b9   : > { %v412_v62 = vsel %vm402_vm1, %v399_v59, 0.0 }
 0x2ba   : > { %v413_v63 = vadd.f32 %v412_v62, %v411_v60  ;;  %v393_v0 = vpop.permute.xlu0 %392 }
 0x2bb   : > { %v401_v2 = vmul.f32 %v393_v0, %v337_v61 }
 0x2bc   : > { %v415_v3 = vadd.f32 %v414_v1, %v413_v63 }
 0x2bd   : > { %v416_v4 = vsel %vm402_vm1, %v401_v2, 0.0 }
 0x2be   : > { %v417_v5 = vadd.f32 %v416_v4, %v415_v3 }
 0x2c0   : > { %419 = vst.msk [vmem:[%s282_s9] sm:$0xff] %vm402_vm1, %v417_v5 }
 0x2c1   : > { %764 = shalt.err (!%p761_p13)
}
 0x2c2   : > { %s765_s28 = scalar_lea.hbm %s1102_s8, 128  ;;  %s769_s21 = scalar_lea.hbm %s1155_s3, 256 }
 0x2c3   : > { %p766_p7 = scmp.ne.s32.totalorder %s1102_s8, %s765_s28  ;;  %p770_p5 = scmp.lt.u32.totalorder %s1102_s8, %s1155_s3 }
 0x2c4   : > { %p771_p2 = scmp.lt.u32.totalorder %s769_s21, %s765_s28  ;;  %p773_p0 = scmp.lt.u32.totalorder %s765_s28, %s1102_s8 }
 0x2c5   : > { %p767_p1 = pnand %p766_p7, %p1176_p6 }
 0x2c6   : > { %p772_p3 = por %p771_p2, %p770_p5 }
 0x2c7   : > { %p768_p11 = pneg %p767_p1 }
 0x2c8   : > { %p774_p8 = por %p773_p0, %p772_p3 }
 0x2ca   : > { %p775_p9 = pnand %p774_p8, %p768_p11 }
 0x2cc   : > { %778 = shalt.err (!%p775_p9)
}
 0x2cd   : > { %588 = dma.vmem_to_hbm [thread:$0]  (%p1176_p6), %s1104_s5, 128, %s1102_s8, %s421_s26  }
 0x2ce PF: > { %s447_s20 = sand.u32 1, %s817_s12   ;;  %p1177_p12 = scmp.ne.s32.totalorder %s1168_s27, 0 }
 0x2cf   : > { %p1178_p4 = scmp.ge.s32.totalorder %s837_s17, 2  ;;  %s448_s4 = scalar_lea.sflag [#allocation4], %s447_s20 }
 0x2d1   : > { %p601_p10 = pnand %p1178_p4, %p1177_p12 }
 0x2d3   : > { %812 = dma.done.wait (!%p601_p10), %s448_s4, 128  }
 0x2d4   : > { %814 = vsyncadd (!%p601_p10), %s448_s4, 4294967168  ;;  %s22_s17 = sadd.s32 1, %s837_s17   ;;  %s1179_s19 = sld [smem:[#allocation12_spill]] }
 0x2d5   : > { %p19_p13 = scmp.ge.s32.totalorder %s22_s17, 4   ;;  %s1180_s14 = sld [smem:[#allocation14_spill]] }
 0x2d6   : > { %s1181_s25 = sld [smem:[#allocation13_spill]]  ;;  %s1182_s12 = smov %s821_s13 }
 0x2d7   : > { %s1184_s15 = smov %s833_s16  ;;  %21 = sbr.rel (!%p19_p13) target bundleno = 10 (0xa), region = 101 }
 0x2da   : > { %s1183_s13 = smov %s1179_s19 }
 0x2dc   : > { %s1185_s16 = smov %s1181_s25 }
 0x2de   :  { %453 = vsyncpa [#allocation3], 1 }
 0x2df   :  { %455 = vsyncpa [#allocation3 + $0x1], 1 }
 0x2e0   :  { %456 = vsyncpa [#allocation6], 1 }
 0x2e1   :  { %458 = vsyncpa [#allocation6 + $0x1], 1 }
 0x2e2   :  { %459 = vsyncpa [#allocation4], 1 }
 0x2e3   :  { %461 = vsyncpa [#allocation4 + $0x1], 1 }

</bundles_post_ra>
